<compile_context>
chip_gen: v7x
topology: tpu7x:2x2x1
jax: 0.10.0
libtpu: 0.0.40
codegen_flags: <defaults>
</compile_context>

<pallas_src>
import functools

import jax
import jax.numpy as jnp
from jax.experimental import pallas as pl
from jax.experimental.pallas import tpu as pltpu


def _round_up(x, m):
    return (x + m - 1) // m * m


def classify_nll_kernel(ctx_ref, wa_ref, ba_ref, wp_ref, tag_ref, nll_ref,
                        feat_sc, m_sc, l_sc, picked_sc, *, tile_v, v_total):
    # ctx:  (TILE_B, shdim)   matmul-operand dtype (bf16 by default)
    # wa:   (ahdim, shdim)    PyTorch layout, contracted on shdim (trans_b)
    # ba:   (1, ahdim)        f32
    # wp:   (TILE_V, ahdim)   PyTorch layout, contracted on ahdim (trans_b)
    # tag:  (TILE_B, 1)       int32
    # nll:  (TILE_B, 1)       f32 per-row negative log-likelihood
    vi = pl.program_id(1)

    @pl.when(vi == 0)
    def _init():
        # activation linear + tanh, computed once per B tile and cached
        acc = jax.lax.dot_general(
            ctx_ref[...], wa_ref[...],
            dimension_numbers=(((1,), (1,)), ((), ())),
            preferred_element_type=jnp.float32)           # (TILE_B, ahdim) f32
        feat = jnp.tanh(acc + ba_ref[...])
        feat_sc[...] = feat.astype(feat_sc.dtype)
        m_sc[...] = jnp.full_like(m_sc, -jnp.inf)
        l_sc[...] = jnp.zeros_like(l_sc)
        picked_sc[...] = jnp.zeros_like(picked_sc)

    # projection for this vocab tile (no bias), f32 accumulate on the MXU
    logits = jax.lax.dot_general(
        feat_sc[...], wp_ref[...],
        dimension_numbers=(((1,), (1,)), ((), ())),
        preferred_element_type=jnp.float32)               # (TILE_B, TILE_V) f32

    col = jax.lax.broadcasted_iota(jnp.int32, logits.shape, 1) + vi * tile_v
    if v_total % tile_v != 0:
        # mask vocab padding columns (only present when V is not tile-aligned)
        logits = jnp.where(col < v_total, logits, -jnp.inf)

    # --- online log-sum-exp over the vocab axis ---
    m_prev = m_sc[...]
    m_new = jnp.maximum(m_prev, jnp.max(logits, axis=-1, keepdims=True))
    l_sc[...] = (l_sc[...] * jnp.exp(m_prev - m_new)
                 + jnp.sum(jnp.exp(logits - m_new), axis=-1, keepdims=True))
    m_sc[...] = m_new

    # --- gather the target logit inside this tile (masked select, no float one-hot) ---
    hit = col == tag_ref[...]                              # (TILE_B, TILE_V)
    picked_sc[...] += jnp.sum(jnp.where(hit, logits, 0.0), axis=-1, keepdims=True)

    @pl.when(vi == pl.num_programs(1) - 1)
    def _finalize():
        # -log_softmax[i, tag[i]] = m + log(sum exp(logit - m)) - logit_tag
        nll_ref[...] = m_sc[...] + jnp.log(l_sc[...]) - picked_sc[...]


def classify_forward(context, tag, w_act, b_act, w_proj,
                     *, tile_b=None, tile_v=None, operand_dtype=jnp.bfloat16):
    """context: [B, shdim], tag: [B] int32.
    w_act: [ahdim, shdim] (PyTorch Linear layout), b_act: [ahdim],
    w_proj: [V, ahdim] (PyTorch layout, kept as-is — no HBM transpose)."""
    B, shdim = context.shape
    ahdim = w_act.shape[0]
    V = w_proj.shape[0]

    if tile_b is None:
        tile_b = min(128, _round_up(B, 8))
    if tile_v is None:
        # single tile for small vocabs; stream 1024-wide blocks for large ones
        # (bf16 1024 x ahdim tiles double-buffer comfortably within v7x's 64 MiB)
        tile_v = V if V <= 2048 else 1024
    b_pad = _round_up(B, tile_b)
    v_pad = _round_up(V, tile_v)

    ctx = context.astype(operand_dtype)
    if b_pad != B:
        ctx = jnp.pad(ctx, ((0, b_pad - B), (0, 0)))
    wa = w_act.astype(operand_dtype)                   # keep [ahdim, shdim]
    ba = b_act.reshape(1, ahdim).astype(jnp.float32)
    wp = w_proj.astype(operand_dtype)                  # keep [V, ahdim]
    if v_pad != V:
        wp = jnp.pad(wp, ((0, v_pad - V), (0, 0)))
    tag2d = tag.reshape(B, 1).astype(jnp.int32)
    if b_pad != B:
        tag2d = jnp.pad(tag2d, ((0, b_pad - B), (0, 0)), constant_values=-1)

    grid = (b_pad // tile_b, v_pad // tile_v)
    kernel = functools.partial(classify_nll_kernel, tile_v=tile_v, v_total=V)

    nll = pl.pallas_call(
        kernel,
        out_shape=jax.ShapeDtypeStruct((b_pad, 1), jnp.float32),
        grid_spec=pltpu.PrefetchScalarGridSpec(
            num_scalar_prefetch=0,
            grid=grid,
            in_specs=[
                pl.BlockSpec((tile_b, shdim), lambda bi, vi: (bi, 0)),  # context
                pl.BlockSpec((ahdim, shdim), lambda bi, vi: (0, 0)),    # W_act
                pl.BlockSpec((1, ahdim), lambda bi, vi: (0, 0)),        # b_act
                pl.BlockSpec((tile_v, ahdim), lambda bi, vi: (vi, 0)),  # W_proj rows
                pl.BlockSpec((tile_b, 1), lambda bi, vi: (bi, 0)),      # tag
            ],
            out_specs=pl.BlockSpec((tile_b, 1), lambda bi, vi: (bi, 0)),
            scratch_shapes=[
                pltpu.VMEM((tile_b, ahdim), operand_dtype),  # cached feat
                pltpu.VMEM((tile_b, 1), jnp.float32),        # running max
                pltpu.VMEM((tile_b, 1), jnp.float32),        # running sum-exp
                pltpu.VMEM((tile_b, 1), jnp.float32),        # gathered target logit
            ],
        ),
        compiler_params=pltpu.CompilerParams(
            dimension_semantics=("parallel", "arbitrary"),
            vmem_limit_bytes=48 * 1024 * 1024,
        ),
    )(ctx, wa, ba, wp, tag2d)

    nll = nll[:B, 0]
    # PyTorch NLLLoss default ignore_index=-100: excluded from the mean.
    valid = tag != -100
    denom = jnp.maximum(jnp.sum(valid.astype(jnp.float32)), 1.0)
    return jnp.sum(jnp.where(valid, nll, 0.0)) / denom


def classify_forward_ref(context, tag, w_act, b_act, w_proj):
    """Pure-JAX f32 reference matching the PyTorch forward."""
    feat = jnp.tanh(context @ w_act.T + b_act)
    logits = feat @ w_proj.T
    logp = jax.nn.log_softmax(logits, axis=-1)
    picked = jnp.take_along_axis(logp, tag[:, None], axis=-1)[:, 0]
    return -jnp.mean(picked)


if __name__ == "__main__":
    # small shapes consistent with the module (shdim=ahdim=32, tag vocab=40, B=12)
    B, shdim, ahdim, V = 12, 32, 32, 40

    key = jax.random.PRNGKey(0)
    k_ctx, k_wa, k_ba, k_wp, k_tag = jax.random.split(key, 5)

    context = jax.random.normal(k_ctx, (B, shdim), dtype=jnp.float32)
    tag = jax.random.randint(k_tag, (B,), 0, V, dtype=jnp.int32)

    # deterministic synthetic params (PyTorch Linear weight layout [out, in])
    w_act = jax.random.normal(k_wa, (ahdim, shdim), dtype=jnp.float32) * 0.1
    b_act = jax.random.normal(k_ba, (ahdim,), dtype=jnp.float32) * 0.1
    w_proj = jax.random.normal(k_wp, (V, ahdim), dtype=jnp.float32) * 0.1

    ref = classify_forward_ref(context, tag, w_act, b_act, w_proj)

    # 1) exercise the full tiled path (multiple B tiles, multiple V tiles with
    #    vocab padding/masking) with bf16 streamed operands.
    loss_bf16 = classify_forward(context, tag, w_act, b_act, w_proj,
                                 tile_b=8, tile_v=16)
    jax.block_until_ready(loss_bf16)
    assert jnp.allclose(loss_bf16, ref, atol=2e-2, rtol=2e-2), (loss_bf16, ref)

    # 2) f32 operands, default (single-tile) sizing — tight numerical check.
    loss_f32 = classify_forward(context, tag, w_act, b_act, w_proj,
                                operand_dtype=jnp.float32)
    jax.block_until_ready(loss_f32)
    assert jnp.allclose(loss_f32, ref, atol=1e-4, rtol=1e-4), (loss_f32, ref)

    print("KERNEL_OK")
</pallas_src>

<mosaic_0001>
module attributes {stable_mosaic.version = 11 : i64} {
  func.func @classify_nll_kernel(%arg0: i32, %arg1: i32, %arg2: memref<8x32xbf16, #tpu.memory_space<vmem>>, %arg3: memref<32x32xbf16, #tpu.memory_space<vmem>>, %arg4: memref<1x32xf32, #tpu.memory_space<vmem>>, %arg5: memref<16x32xbf16, #tpu.memory_space<vmem>>, %arg6: memref<8x1xi32, #tpu.memory_space<vmem>>, %arg7: memref<8x1xf32, #tpu.memory_space<vmem>>, %arg8: memref<8x32xbf16, #tpu.memory_space<vmem>>, %arg9: memref<8x1xf32, #tpu.memory_space<vmem>>, %arg10: memref<8x1xf32, #tpu.memory_space<vmem>>, %arg11: memref<8x1xf32, #tpu.memory_space<vmem>>) attributes {dimension_semantics = [#tpu.dimension_semantics<parallel>, #tpu.dimension_semantics<arbitrary>], iteration_bounds = array<i64: 2, 3>, scalar_prefetch = 0 : i64, scratch_operands = 4 : i64, tpu.core_type = #tpu.core_type<tc>, window_params = [{transform_indices = @transform_0, window_bounds = array<i64: 8, 32>}, {pipeline_mode = #tpu.pipeline_mode<synchronous>, transform_indices = @transform_1, window_bounds = array<i64: 32, 32>}, {pipeline_mode = #tpu.pipeline_mode<synchronous>, transform_indices = @transform_2, window_bounds = array<i64: 1, 32>}, {transform_indices = @transform_3, window_bounds = array<i64: 16, 32>}, {transform_indices = @transform_4, window_bounds = array<i64: 8, 1>}, {transform_indices = @transform_5, window_bounds = array<i64: 8, 1>}]} {
    %c0_i32 = arith.constant 0 : i32
    %0 = arith.cmpi eq, %arg1, %c0_i32 : i32
    %1 = arith.extui %0 : i1 to i32
    %c0_i32_0 = arith.constant 0 : i32
    %2 = arith.cmpi ne, %1, %c0_i32_0 : i32
    scf.if %2 {
      %c0_24 = arith.constant 0 : index
      %c0_25 = arith.constant 0 : index
      %43 = vector.load %arg2[%c0_24, %c0_25] : memref<8x32xbf16, #tpu.memory_space<vmem>>, vector<8x32xbf16>
      %c0_26 = arith.constant 0 : index
      %c0_27 = arith.constant 0 : index
      %44 = vector.load %arg3[%c0_26, %c0_27] : memref<32x32xbf16, #tpu.memory_space<vmem>>, vector<32x32xbf16>
      %cst_28 = arith.constant dense<0.000000e+00> : vector<8x32xf32>
      %45 = tpu.matmul %43, %44, %cst_28 {dimension_numbers = #tpu.dot_dimension_numbers<[1], [1], [0], [0], [0, 0, 1, 0], [], []>} : vector<8x32xbf16>, vector<32x32xbf16>, vector<8x32xf32> -> vector<8x32xf32>
      %c0_29 = arith.constant 0 : index
      %c0_30 = arith.constant 0 : index
      %46 = vector.load %arg4[%c0_29, %c0_30] : memref<1x32xf32, #tpu.memory_space<vmem>>, vector<1x32xf32>
      %47 = vector.broadcast %46 : vector<1x32xf32> to vector<8x32xf32>
      %48 = arith.addf %45, %47 : vector<8x32xf32>
      %49 = math.tanh %48 : vector<8x32xf32>
      %50 = arith.truncf %49 : vector<8x32xf32> to vector<8x32xbf16>
      %c0_31 = arith.constant 0 : index
      %c0_32 = arith.constant 0 : index
      %51 = vector.load %arg8[%c0_31, %c0_32] : memref<8x32xbf16, #tpu.memory_space<vmem>>, vector<8x32xbf16>
      tpu.vector_store %arg8[%c0_31, %c0_32], %50 {strides = array<i32>} : memref<8x32xbf16, #tpu.memory_space<vmem>>, vector<8x32xbf16>,
      %cst_33 = arith.constant 0xFF800000 : f32
      %52 = vector.broadcast %cst_33 : f32 to vector<8x1xf32>
      %c0_34 = arith.constant 0 : index
      %c0_35 = arith.constant 0 : index
      %53 = vector.load %arg9[%c0_34, %c0_35] : memref<8x1xf32, #tpu.memory_space<vmem>>, vector<8x1xf32>
      tpu.vector_store %arg9[%c0_34, %c0_35], %52 {strides = array<i32>} : memref<8x1xf32, #tpu.memory_space<vmem>>, vector<8x1xf32>,
      %cst_36 = arith.constant 0.000000e+00 : f32
      %54 = vector.broadcast %cst_36 : f32 to vector<8x1xf32>
      %c0_37 = arith.constant 0 : index
      %c0_38 = arith.constant 0 : index
      %55 = vector.load %arg10[%c0_37, %c0_38] : memref<8x1xf32, #tpu.memory_space<vmem>>, vector<8x1xf32>
      tpu.vector_store %arg10[%c0_37, %c0_38], %54 {strides = array<i32>} : memref<8x1xf32, #tpu.memory_space<vmem>>, vector<8x1xf32>,
      %cst_39 = arith.constant 0.000000e+00 : f32
      %56 = vector.broadcast %cst_39 : f32 to vector<8x1xf32>
      %c0_40 = arith.constant 0 : index
      %c0_41 = arith.constant 0 : index
      %57 = vector.load %arg11[%c0_40, %c0_41] : memref<8x1xf32, #tpu.memory_space<vmem>>, vector<8x1xf32>
      tpu.vector_store %arg11[%c0_40, %c0_41], %56 {strides = array<i32>} : memref<8x1xf32, #tpu.memory_space<vmem>>, vector<8x1xf32>,
    } else {
    }
    %c0 = arith.constant 0 : index
    %c0_1 = arith.constant 0 : index
    %3 = vector.load %arg8[%c0, %c0_1] : memref<8x32xbf16, #tpu.memory_space<vmem>>, vector<8x32xbf16>
    %c0_2 = arith.constant 0 : index
    %c0_3 = arith.constant 0 : index
    %4 = vector.load %arg5[%c0_2, %c0_3] : memref<16x32xbf16, #tpu.memory_space<vmem>>, vector<16x32xbf16>
    %cst = arith.constant dense<0.000000e+00> : vector<8x16xf32>
    %5 = tpu.matmul %3, %4, %cst {dimension_numbers = #tpu.dot_dimension_numbers<[1], [1], [0], [0], [0, 0, 1, 0], [], []>} : vector<8x32xbf16>, vector<16x32xbf16>, vector<8x16xf32> -> vector<8x16xf32>
    %6 = tpu.iota {dimensions = array<i32: 1>} : vector<8x16xi32>
    %c16_i32 = arith.constant 16 : i32
    %7 = arith.muli %arg1, %c16_i32 : i32
    %8 = vector.broadcast %7 : i32 to vector<8x16xi32>
    %9 = arith.addi %6, %8 : vector<8x16xi32>
    %c40_i32 = arith.constant 40 : i32
    %10 = vector.broadcast %c40_i32 : i32 to vector<8x16xi32>
    %11 = arith.cmpi slt, %9, %10 : vector<8x16xi32>
    %cst_4 = arith.constant 0xFF800000 : f32
    %12 = vector.broadcast %cst_4 : f32 to vector<8x16xf32>
    %13 = arith.select %11, %5, %12 : vector<8x16xi1>, vector<8x16xf32>
    %c0_5 = arith.constant 0 : index
    %c0_6 = arith.constant 0 : index
    %14 = vector.load %arg9[%c0_5, %c0_6] : memref<8x1xf32, #tpu.memory_space<vmem>>, vector<8x1xf32>
    %cst_7 = arith.constant dense<0xFF800000> : vector<8xf32>
    %15 = vector.multi_reduction <maximumf>, %13, %cst_7 [1] : vector<8x16xf32> to vector<8xf32>
    %16 = vector.shape_cast %15 : vector<8xf32> to vector<8x1xf32>
    %17 = arith.maximumf %14, %16 : vector<8x1xf32>
    %c0_8 = arith.constant 0 : index
    %c0_9 = arith.constant 0 : index
    %18 = vector.load %arg10[%c0_8, %c0_9] : memref<8x1xf32, #tpu.memory_space<vmem>>, vector<8x1xf32>
    %19 = arith.subf %14, %17 : vector<8x1xf32>
    %20 = math.exp %19 : vector<8x1xf32>
    %21 = arith.mulf %18, %20 : vector<8x1xf32>
    %22 = vector.broadcast %17 : vector<8x1xf32> to vector<8x16xf32>
    %23 = arith.subf %13, %22 : vector<8x16xf32>
    %24 = math.exp %23 : vector<8x16xf32>
    %cst_10 = arith.constant dense<0.000000e+00> : vector<8xf32>
    %25 = vector.multi_reduction <add>, %24, %cst_10 [1] : vector<8x16xf32> to vector<8xf32>
    %26 = vector.shape_cast %25 : vector<8xf32> to vector<8x1xf32>
    %27 = arith.addf %21, %26 : vector<8x1xf32>
    %c0_11 = arith.constant 0 : index
    %c0_12 = arith.constant 0 : index
    %28 = vector.load %arg10[%c0_11, %c0_12] : memref<8x1xf32, #tpu.memory_space<vmem>>, vector<8x1xf32>
    tpu.vector_store %arg10[%c0_11, %c0_12], %27 {strides = array<i32>} : memref<8x1xf32, #tpu.memory_space<vmem>>, vector<8x1xf32>,
    %c0_13 = arith.constant 0 : index
    %c0_14 = arith.constant 0 : index
    %29 = vector.load %arg9[%c0_13, %c0_14] : memref<8x1xf32, #tpu.memory_space<vmem>>, vector<8x1xf32>
    tpu.vector_store %arg9[%c0_13, %c0_14], %17 {strides = array<i32>} : memref<8x1xf32, #tpu.memory_space<vmem>>, vector<8x1xf32>,
    %c0_15 = arith.constant 0 : index
    %c0_16 = arith.constant 0 : index
    %30 = vector.load %arg6[%c0_15, %c0_16] : memref<8x1xi32, #tpu.memory_space<vmem>>, vector<8x1xi32>
    %31 = vector.broadcast %30 : vector<8x1xi32> to vector<8x16xi32>
    %32 = arith.cmpi eq, %9, %31 : vector<8x16xi32>
    %c0_17 = arith.constant 0 : index
    %c0_18 = arith.constant 0 : index
    %33 = vector.load %arg11[%c0_17, %c0_18] : memref<8x1xf32, #tpu.memory_space<vmem>>, vector<8x1xf32>
    %cst_19 = arith.constant 0.000000e+00 : f32
    %34 = vector.broadcast %cst_19 : f32 to vector<8x16xf32>
    %35 = arith.select %32, %13, %34 : vector<8x16xi1>, vector<8x16xf32>
    %cst_20 = arith.constant dense<0.000000e+00> : vector<8xf32>
    %36 = vector.multi_reduction <add>, %35, %cst_20 [1] : vector<8x16xf32> to vector<8xf32>
    %37 = vector.shape_cast %36 : vector<8xf32> to vector<8x1xf32>
    %38 = arith.addf %33, %37 : vector<8x1xf32>
    %c0_21 = arith.constant 0 : index
    %c0_22 = arith.constant 0 : index
    %39 = vector.load %arg11[%c0_21, %c0_22] : memref<8x1xf32, #tpu.memory_space<vmem>>, vector<8x1xf32>
    tpu.vector_store %arg11[%c0_21, %c0_22], %38 {strides = array<i32>} : memref<8x1xf32, #tpu.memory_space<vmem>>, vector<8x1xf32>,
    %c2_i32 = arith.constant 2 : i32
    %40 = arith.cmpi eq, %arg1, %c2_i32 : i32
    %41 = arith.extui %40 : i1 to i32
    %c0_i32_23 = arith.constant 0 : i32
    %42 = arith.cmpi ne, %41, %c0_i32_23 : i32
    scf.if %42 {
      %c0_24 = arith.constant 0 : index
      %c0_25 = arith.constant 0 : index
      %43 = vector.load %arg9[%c0_24, %c0_25] : memref<8x1xf32, #tpu.memory_space<vmem>>, vector<8x1xf32>
      %c0_26 = arith.constant 0 : index
      %c0_27 = arith.constant 0 : index
      %44 = vector.load %arg10[%c0_26, %c0_27] : memref<8x1xf32, #tpu.memory_space<vmem>>, vector<8x1xf32>
      %45 = math.log %44 : vector<8x1xf32>
      %46 = arith.addf %43, %45 : vector<8x1xf32>
      %c0_28 = arith.constant 0 : index
      %c0_29 = arith.constant 0 : index
      %47 = vector.load %arg11[%c0_28, %c0_29] : memref<8x1xf32, #tpu.memory_space<vmem>>, vector<8x1xf32>
      %48 = arith.subf %46, %47 : vector<8x1xf32>
      %c0_30 = arith.constant 0 : index
      %c0_31 = arith.constant 0 : index
      %49 = vector.load %arg7[%c0_30, %c0_31] : memref<8x1xf32, #tpu.memory_space<vmem>>, vector<8x1xf32>
      tpu.vector_store %arg7[%c0_30, %c0_31], %48 {strides = array<i32>} : memref<8x1xf32, #tpu.memory_space<vmem>>, vector<8x1xf32>,
    } else {
    }
    return
  }
  func.func @transform_0(%arg0: i32, %arg1: i32) -> (i32, i32) {
    %c0_i32 = arith.constant 0 : i32
    %c0_i32_0 = arith.constant 0 : i32
    return %arg0, %c0_i32 : i32, i32
  }
  func.func @transform_1(%arg0: i32, %arg1: i32) -> (i32, i32) {
    %c0_i32 = arith.constant 0 : i32
    %c0_i32_0 = arith.constant 0 : i32
    %c0_i32_1 = arith.constant 0 : i32
    return %c0_i32, %c0_i32_0 : i32, i32
  }
  func.func @transform_2(%arg0: i32, %arg1: i32) -> (i32, i32) {
    %c0_i32 = arith.constant 0 : i32
    %c0_i32_0 = arith.constant 0 : i32
    %c0_i32_1 = arith.constant 0 : i32
    return %c0_i32, %c0_i32_0 : i32, i32
  }
  func.func @transform_3(%arg0: i32, %arg1: i32) -> (i32, i32) {
    %c0_i32 = arith.constant 0 : i32
    %c0_i32_0 = arith.constant 0 : i32
    return %arg1, %c0_i32 : i32, i32
  }
  func.func @transform_4(%arg0: i32, %arg1: i32) -> (i32, i32) {
    %c0_i32 = arith.constant 0 : i32
    %c0_i32_0 = arith.constant 0 : i32
    return %arg0, %c0_i32 : i32, i32
  }
  func.func @transform_5(%arg0: i32, %arg1: i32) -> (i32, i32) {
    %c0_i32 = arith.constant 0 : i32
    %c0_i32_0 = arith.constant 0 : i32
    return %arg0, %c0_i32 : i32, i32
  }
}

</mosaic_0001>

<bundles_post_ra>
// kernel: tpu_custom_call.1
= control target key start
LH: loop header
LB: loop body
LE: loop exit
PB: predicated region body
PF: predicated region fallthrough
CT: control target
= control target key end

     0   :  { %s731_s18 = smov 0   ;;  %s733_s19 = smov 0   ;;  %s819_s0 = inlined_call_operand.vmem [shape: bf16[16,32], index: 0, kind: input, shape index: {}]   ;;  %s820_s1 = inlined_call_operand.vmem [shape: bf16[32,32], index: 1, kind: input, shape index: {}]   ;;  %s821_s2 = inlined_call_operand.vmem [shape: f32[1,32], index: 2, kind: input, shape index: {}]   ;;  %s822_s3 = inlined_call_operand.vmem [shape: bf16[48,32], index: 3, kind: input, shape index: {}]   ;;  %s823_s4 = inlined_call_operand.vmem [shape: s32[16,1], index: 4, kind: input, shape index: {}]   ;;  %s824_s5 = inlined_call_operand.vmem [shape: f32[16,1], index: 5, kind: output, shape index: {}]  }
   0x1   :  { %s735_s20 = smov 0   ;;  %s737_s21 = smov 0  }
   0x2   :  { %s739_s22 = smov 0  }
   0x3 LB: > { %s24_s23 = sadd.s32 1, %s685_s20  ;;  %s27_s24 = sadd.s32 1, %s689_s21  ;;  %s693_s22 = sphi %s739_s22, %s15_s22   ;;  %s689_s21 = sphi %s737_s21, %s828_s21   ;;  %s685_s20 = sphi %s735_s20, %s827_s20   ;;  %s681_s19 = sphi %s733_s19, %s826_s19   ;;  %s677_s18 = sphi %s731_s18, %s825_s18  }
   0x4   : > { %p25_p0 = scmp.ge.s32.totalorder %s24_s23, 3  ;;  %p560_p1 = scmp.ge.s32.totalorder %s693_s22, 1 }
   0x5   : > { %p218_p2 = scmp.lt.s32.totalorder %s693_s22, 7 }
   0x6   : > { %s830_s23 = smov (%p25_p0, %s24_s23), 0  ;;  %s832_s24 = smov (!%p25_p0, %s27_s24), %s689_s21 }
   0x7   : > { %p219_p3 = pnand %p560_p1, %p218_p2  ;;  %p29_p4 = scmp.ge.s32.totalorder %s832_s24, 2 }
   0x8   : > { %p253_p5 = scmp.lt.s32.totalorder (!%p219_p3), %s681_s19, 1  ;;  %s562_s25 = sshll.u32 (!%p219_p3), %s677_s18, 1 }
   0x9   : > { %s834_s24 = smov (%p29_p4, %s832_s24), 0  ;;  %222 = sbr.rel (%p219_p3) target bundleno = 944 (0x3b0), region = 40 }
   0xa   : > { %p258_p6 = scmp.lt.s32.totalorder (!%p219_p3), %s562_s25, 5  ;;  %p566_p7 = scmp.ne.s32.totalorder (!%p219_p3), %s677_s18, 0 }
  0x10   : > { %s836_s19 = smov (!%p253_p5, %s681_s19), 1  ;;  %s838_s25 = smov (!%p258_p6, %s562_s25), 5 }
  0x11   : > { %s561_s26 = sshll.u32 %s836_s19, 2  ;;  %s564_s27 = sshll.u32 %s836_s19, 3  ;;  %vm352_vm0 = vcmask (!%p566_p7), 7168   ;;  %v642_v0 = vld [vmem:[%s820_s1] sm:$0xff] (!%p566_p7)   ;;  %v695_v1 = vmov (!%p566_p7), 0.0   ;;  %v696_v2 = vmov (!%p566_p7), -inf  }
  0x12   : > { %s256_s30 = scalar_lea.vmem %s819_s0, %s561_s26  ;;  %s563_s6 = sshll.u32 %s838_s25, 2  ;;  %582 = vmatprep.subr.bf16.mxu0 (!%p566_p7), %v695_v1  ;;  %353 = vst.msk [vmem:[#allocation3] sm:$0xff] (!%p566_p7), %vm352_vm0, %v696_v2  ;;  %354 = vst.msk [vmem:[#allocation4] sm:$0xff] (!%p566_p7), %vm352_vm0, %v695_v1  ;;  %vm298_vm1 = vcmask (!%p566_p7), 261120   ;;  %vm697_vm2 = vmmov (!%p566_p7), 0   ;;  %v643_v4 = vld [vmem:[%s820_s1 + $0x8] sm:$0xff] (!%p566_p7)  }
  0x13   : > { %s770_s9 = scalar_lea.vmem %s822_s3, %s563_s6  ;;  %s775_s12 = scalar_lea.vmem %s823_s4, %s564_s27  ;;  %355 = vst.msk [vmem:[#allocation5] sm:$0xff] (!%p566_p7), %vm352_vm0, %v695_v1  ;;  %v303_v3 = vsel (!%p566_p7), %vm298_vm1, %v642_v0, 0  ;;  %586 = vmatprep.mubr.msk.bf16.mxu0 (!%p566_p7), %vm697_vm2, %v695_v1  ;;  %v306_v5 = vsel (!%p566_p7), %vm298_vm1, %v643_v4, 0  ;;  %v276_v6 = vld [vmem:[%s256_s30] sm:$0xf] (!%p566_p7)  ;;  %vm350_vm3 = vcmask (!%p566_p7), 257024  }
  0x14   : > { %s780_s15 = scalar_lea.vmem %s824_s5, %s564_s27  ;;  %275 = sbr.rel (%p566_p7) target bundleno = 263 (0x107), region = 44  ;;  %583 = vmatpush3.bf16.xpose.msra.mxu0 (!%p566_p7), %v303_v3  ;;  %v567_v7 = vld [vmem:[%s821_s2] ss:$0 sm:$0xff] (!%p566_p7) }
  0x15   : > { %584 = vmatprep.subr.bf16.mxu0 (!%p566_p7), %v695_v1 }
  0x1c   : > { %585 = vmatpush3.bf16.xpose.msra.mxu0 %v306_v5 }
  0x23   : > { %587 = vmatmul.mubr.msk.bf16.vlgmr.msra.gmra.mrb[0].mxu0 %vm298_vm1, %v276_v6 }
  0xf6   : > { %v342_v8 = vpop.f32.mrb[0].mxu0 }
  0xf7   : > { %v343_v9 = vadd.f32 %v567_v7, %v342_v8  ;;  %v588_v10 = vpop.f32.mrb[1].mxu0 }
  0xf8   : > { %v345_v11 = vpop.f32.mrb[2].mxu0 }
  0xf9   : > { %644 = vtanh.f32 %v343_v9  ;;  %v589_v12 = vpop.f32.mrb[3].mxu0 }
 0x103   : > { %v645_v13 = vpop.eup %644 }
 0x104   : > { %v349_v14 = vpack.c.bf16 %v645_v13, %v645_v13 }
 0x106   : > { %351 = vst.msk [vmem:[#allocation2] sm:$0xf] %vm350_vm3, %v349_v14 }
 0x107 PF: > { %v648_v15 = vld [vmem:[%s770_s9] sm:$0xff]   ;;  %v698_v16 = vmov 0.0   ;;  %vm364_vm4 = vcmask 261120   ;;  %vm699_vm5 = vmmov 0   ;;  %v700_v19 = vmov 0   ;;  %s573_s28 = sshll.u32 %s677_s18, 4 }
 0x108   : > { %590 = vmatprep.subr.bf16.mxu0 %v698_v16  ;;  %v444_v17 = vld [vmem:[%s775_s12] sm:$0xff]  ;;  %v369_v18 = vsel %vm364_vm4, %v648_v15, 0  ;;  %592 = vmatprep.mubr.msk.bf16.mxu0 %vm699_vm5, %v698_v16  ;;  %v411_v21 = vlaneseq  ;;  %v414_v23 = vstv %s573_s28  ;;  %vm419_vm7 = vcmask 130048   ;;  %v424_v45 = vld [vmem:[#allocation4] sm:$0xff]  ;;  %v449_v49 = vld [vmem:[#allocation5] sm:$0xff]  ;;  %p574_p8 = scmp.ne.s32.totalorder %s677_s18, 2 }
 0x109   : > { %647 = vset.pattern.permute.xlu1 %v700_v19  ;;  %591 = vmatpush3.bf16.xpose.msra.mxu0 %v369_v18  ;;  %v418_v31 = vld [vmem:[#allocation3] sm:$0xff]  ;;  %vm441_vm8 = vcmask 7168  }
 0x10a   : > { %446 = vperm.xlu1 %647, %v444_v17   ;;  %646 = vset.pattern.permute.xlu0 %v700_v19  ;;  %v412_v22 = vand.u32 127, %v411_v21 }
 0x10c   : > { %v415_v24 = vadd.s32 %v414_v23, %v412_v22 }
 0x10d   : > { %v356_v20 = vld [vmem:[#allocation2] sm:$0xf] }
 0x10e   : > { %vm416_vm6 = vcmp.lt.s32.totalorder %v415_v24, 40 }
 0x110   : > { %593 = vmatmul.mubr.msk.bf16.vlgmr.msra.gmra.mrb[0].mxu0 %vm364_vm4, %v356_v20 }
 0x189   : > { %v447_v38 = vpop.permute.xlu1 %446 }
 0x18a   : > { %vm448_vm9 = vcmp.eq.s32.totalorder %v415_v24, %v447_v38 }
 0x1e3   : > { %v405_v25 = vpop.f32.mrb[0].mxu0 }
 0x1e4   : > { %v417_v26 = vsel %vm416_vm6, %v405_v25, -inf  ;;  %v594_v27 = vpop.f32.mrb[1].mxu0 }
 0x1e5   : > { %v408_v28 = vpop.f32.mrb[2].mxu0  ;;  %v420_v29 = vsel %vm419_vm7, %v417_v26, -inf  ;;  %v450_v41 = vsel %vm448_vm9, %v417_v26, 0.0 }
 0x1e6   : > { %421 = vmax.xlane.f32.xlu0 %v420_v29  ;;  %v595_v30 = vpop.f32.mrb[3].mxu0  ;;  %v451_v42 = vsel %vm419_vm7, %v450_v41, 0.0 }
 0x273   : > { %v422_v32 = vpop.xlane.xlu0 %421 }
 0x274   : > { %v423_v33 = vmax.f32 %v418_v31, %v422_v32 }
 0x276   : > { %v425_v34 = vsub.f32 %v418_v31, %v423_v33  ;;  %443 = vst.msk [vmem:[#allocation3] sm:$0xff] %vm441_vm8, %v423_v33  ;;  %431 = vperm.xlu0 %646, %v423_v33  }
 0x278   : > { %v426_v43 = vmul.f32 1.442695, %v425_v34 }
 0x27d   : > { %v460_v54 = vld [vmem:[#allocation3] sm:$0xff] (!%p574_p8) }
 0x2f5   : > { %v432_v35 = vpop.permute.xlu0 %431 }
 0x2f6   : > { %v434_v36 = vsub.f32 %v417_v26, %v432_v35 }
 0x2f8   : > { %v435_v37 = vmul.f32 1.442695, %v434_v36 }
 0x2fa   : > { %649 = vpow2.f32 %v435_v37 }
 0x2fb   : > { %651 = vpow2.f32 %v426_v43 }
 0x304   : > { %v650_v39 = vpop.eup %649 }
 0x305   : > { %v437_v40 = vsel %vm419_vm7, %v650_v39, 0.0  ;;  %v652_v44 = vpop.eup %651 }
 0x306   : > { %438 = vadd.xlane.f32.xlu1 %v437_v40  ;;  %v428_v46 = vmul.f32 %v652_v44, %v424_v45 }
 0x30a   : > { %452 = vadd.xlane.f32.xlu1 %v451_v42 }
 0x393   : > { %v439_v47 = vpop.xlane.xlu1 %438 }
 0x394   : > { %v440_v48 = vadd.f32 %v439_v47, %v428_v46  ;;  %459 = sbr.rel (%p574_p8) target bundleno = 944 (0x3b0), region = 48 }
 0x396   : > { %442 = vst.msk [vmem:[#allocation4] sm:$0xff] %vm441_vm8, %v440_v48 }
 0x397   : > { %v453_v50 = vpop.xlane.xlu1 %452 }
 0x398   : > { %v454_v51 = vadd.f32 %v453_v50, %v449_v49 }
 0x39a   : > { %455 = vst.msk [vmem:[#allocation5] sm:$0xff] %vm441_vm8, %v454_v51 }
 0x39d   : > { %v461_v52 = vld [vmem:[#allocation4] sm:$0xff] }
 0x39e   : > { %653 = vlog2.f32 %v461_v52 }
 0x3a1   : > { %v465_v56 = vld [vmem:[#allocation5] sm:$0xff] }
 0x3a8   : > { %v654_v53 = vpop.eup %653 }
 0x3a9   : > { %v463_v55 = vmul.f32 0.6931472, %v654_v53 }
 0x3ab   : > { %v464_v57 = vadd.f32 %v463_v55, %v460_v54 }
 0x3ad   : > { %v466_v58 = vsub.f32 %v464_v57, %v465_v56 }
 0x3af   : > { %467 = vst.msk [vmem:[%s780_s15] sm:$0xff] %vm441_vm8, %v466_v58 }
 0x3b0 PF: > { %s15_s22 = sadd.s32 1, %s693_s22   ;;  %s825_s18 = smov %s685_s20 }
 0x3b1   : > { %p12_p9 = scmp.ge.s32.totalorder %s15_s22, 8   ;;  %s826_s19 = smov %s689_s21 }
 0x3b2   : > { %s827_s20 = smov %s830_s23  ;;  %s828_s21 = smov %s834_s24 }
 0x3b3   :  { %14 = sbr.rel (!%p12_p9) target bundleno = 3 (0x3), region = 84 }

</bundles_post_ra>
